<compile_context>
chip_gen: v7x
topology: tpu7x:2x2x1
jax: 0.10.0
libtpu: 0.0.40
codegen_flags: <defaults>
</compile_context>

<pallas_src>
import jax
import jax.numpy as jnp
from jax import lax
from jax.experimental import pallas as pl
from jax.experimental.pallas import tpu as pltpu


# --------------------------------------------------------------------------- #
# helpers: tiling + VMEM sizing (generation-aware)
# --------------------------------------------------------------------------- #

def _round_up(x, m):
    return (x + m - 1) // m * m


def _vmem_capacity_bytes():
    """Physical VMEM per core; conservative 64 MiB (v7x-class) fallback."""
    try:
        return int(pltpu.get_tpu_info().vmem_capacity_bytes)
    except Exception:
        return 64 * 1024 * 1024


def _vmem_budget_bytes(cap):
    """Scoped-VMEM cap we are willing to request for this kernel."""
    if cap <= 64 * 1024 * 1024:          # v7x-class: 64 MiB physical
        return 48 * 1024 * 1024
    return 100 * 1024 * 1024             # v5e / v6e: 128 MiB physical


def _tb_ref(cap):
    """Reference / max batch-tile size per generation (multiple of 16 for bf16)."""
    return 512 if cap <= 64 * 1024 * 1024 else 1024


def _est_vmem_bytes(tb, tn, e, l):
    """Honest VMEM estimate including the (tb, tn) f32 compute temporaries."""
    bf16, f32 = 2, 4
    streamed = 2 * (l * tn * bf16 + tn * f32)          # wo / bo tiles (double-buffered)
    resident = (2 * tb * e * bf16                      # gathered embeddings (dbl-buf)
                + 2 * (e * l * bf16 + l * f32)         # wh / bh (dbl-buf; tiny)
                + 2 * (tb * l * f32 + tb * f32)        # latent / lse outputs (dbl-buf)
                + tb * l * f32 + tb * l * bf16         # latent scratch (f32 + bf16)
                + 2 * tb * f32)                        # m / l running scratch
    temps = 3 * tb * tn * f32                          # logits + exp + reduce temps
    return streamed + resident + temps


def _pick_tile_n(n_pad, e, l, budget, tb_ref):
    """Largest vocab tile that fits the budget; full vocab if possible (grid collapse)."""
    if _est_vmem_bytes(tb_ref, n_pad, e, l) <= budget:
        return n_pad                                   # w_out fully VMEM-resident
    for tn in (4096, 2048, 1024, 512, 256, 128):
        if tn < n_pad and _est_vmem_bytes(tb_ref, tn, e, l) <= budget:
            return tn
    return 128


def _pick_tile_b(b, tn, e, l, budget, cap):
    tb = min(_tb_ref(cap), _round_up(b, 16))
    while tb > 16 and _est_vmem_bytes(tb, tn, e, l) > budget:
        tb = _round_up(tb // 2, 16)
    # v7x-class (2 TensorCores): make sure the 'parallel' batch axis has >= 2 tiles.
    if cap <= 64 * 1024 * 1024 and b > 16 and _round_up(b, tb) // tb < 2:
        tb = _round_up((b + 1) // 2, 16)
    return tb


def _vmem_limit_bytes(tb, tn, e, l, cap):
    est = _est_vmem_bytes(tb, tn, e, l)
    return int(min(_vmem_budget_bytes(cap),
                   max(16 * 1024 * 1024, int(1.25 * est))))


# --------------------------------------------------------------------------- #
# kernel
# --------------------------------------------------------------------------- #

def bionet_kernel(emb_ref, wh_ref, bh_ref, wo_ref, bo_ref,
                  latent_ref, lse_ref,
                  latent_sc, latbf_sc, m_sc, l_sc):
    n = pl.program_id(1)

    @pl.when(n == 0)
    def _init():
        # hidden linear: bf16 on the MXU, f32 accumulation, f32 bias add
        h = jnp.dot(emb_ref[...], wh_ref[...],
                    preferred_element_type=jnp.float32) + bh_ref[...]
        # safediv L2 row-normalization (rsqrt on the EUP, norm==0 guard)
        nrm_sq = jnp.sum(h * h, axis=1, keepdims=True)
        inv = jnp.where(nrm_sq == 0.0, jnp.float32(1.0), lax.rsqrt(nrm_sq))
        lat = h * inv
        latent_sc[...] = lat
        # hoisted f32 -> bf16 cast: done once per batch tile, reused every vocab tile
        latbf_sc[...] = lat.astype(latbf_sc.dtype)
        m_sc[...] = jnp.full_like(m_sc, -jnp.inf)
        l_sc[...] = jnp.zeros_like(l_sc)

    # logits tile: (TB, L) @ (L, TN) + (1, TN) — bf16 matmul, f32 accumulate
    logits = jnp.dot(latbf_sc[...], wo_ref[...],
                     preferred_element_type=jnp.float32) + bo_ref[...]

    # online logsumexp accumulators (target-logit extraction moved to JAX glue)
    m_prev = m_sc[...]
    m_new = jnp.maximum(m_prev, jnp.max(logits, axis=1, keepdims=True))
    alpha = jnp.exp(m_prev - m_new)
    l_sc[...] = alpha * l_sc[...] + jnp.sum(jnp.exp(logits - m_new),
                                            axis=1, keepdims=True)
    m_sc[...] = m_new

    @pl.when(n == pl.num_programs(1) - 1)
    def _finalize():
        latent_ref[...] = latent_sc[...]
        lse_ref[...] = m_sc[...] + jnp.log(l_sc[...])


# --------------------------------------------------------------------------- #
# parameter prep + wrapper
# --------------------------------------------------------------------------- #

def prepare_params(params):
    """One-time prep: pre-transpose, pad the vocab dim to a VMEM-aware tile
    multiple, and cast matmul weights to bf16 (accumulation stays f32)."""
    emb_table = params["emb_table"]              # (num_nodes, emb_dim)
    w_hidden = params["w_hidden"]                # (latent, emb_dim)
    b_hidden = params["b_hidden"]                # (latent,)
    w_out = params["w_out"]                      # (num_nodes, latent)
    b_out = params["b_out"]                      # (num_nodes,)

    num_nodes, emb_dim = emb_table.shape
    latent = w_hidden.shape[0]

    cap = _vmem_capacity_bytes()
    budget = _vmem_budget_bytes(cap)
    n_pad_min = _round_up(num_nodes, 128)
    tn = _pick_tile_n(n_pad_min, emb_dim, latent, budget, _tb_ref(cap))
    n_pad = _round_up(num_nodes, tn)

    wo_t = jnp.zeros((latent, n_pad), jnp.float32).at[:, :num_nodes].set(w_out.T)
    bo = jnp.full((1, n_pad), -1e30, jnp.float32).at[0, :num_nodes].set(b_out)

    # TODO(synk): optional int8 (v6e) / fp8 (v7x) quantization of w_out would halve
    # the dominant HBM stream; kept bf16 here for accuracy/simplicity.
    return {
        "emb_table": emb_table.astype(jnp.bfloat16),
        "w_hidden_t": w_hidden.T.astype(jnp.bfloat16),      # (emb_dim, latent)
        "b_hidden": b_hidden.reshape(1, latent).astype(jnp.float32),
        "w_out_t": wo_t.astype(jnp.bfloat16),               # (latent, n_pad)
        "b_out": bo,                                        # (1, n_pad), -1e30 pad
    }


def bionet_embedding_forward(source, targets, prepared):
    """source, targets: (B,) int32.  Returns (latent (B, L) f32, scalar mean CE loss)."""
    emb_table = prepared["emb_table"]
    wh = prepared["w_hidden_t"]
    bh = prepared["b_hidden"]
    wo = prepared["w_out_t"]
    bo = prepared["b_out"]

    B = source.shape[0]
    E = emb_table.shape[1]
    L = wh.shape[1]
    N_pad = wo.shape[1]

    cap = _vmem_capacity_bytes()
    budget = _vmem_budget_bytes(cap)
    # Recompute the same TN prepare_params used (deterministic; TN divides N_pad).
    TN = _pick_tile_n(N_pad, E, L, budget, _tb_ref(cap))
    TB = _pick_tile_b(B, TN, E, L, budget, cap)
    B_pad = _round_up(B, TB)

    src = jnp.pad(source.astype(jnp.int32), (0, B_pad - B))

    # glue: data-dependent embedding-row gather stays in plain JAX
    emb = jnp.take(emb_table, src, axis=0)                    # (B_pad, E) bf16

    # NOTE: wh/bh/emb are batch-resident along the inner vocab axis; single-
    # buffering (pl.Buffered(1)) would reclaim a little VMEM but the estimate
    # above already charges their double buffers, so it is left at the default.
    latent_pad, lse_pad = pl.pallas_call(
        bionet_kernel,
        grid_spec=pltpu.PrefetchScalarGridSpec(
            num_scalar_prefetch=0,
            grid=(B_pad // TB, N_pad // TN),
            in_specs=[
                pl.BlockSpec((TB, E), lambda b, n: (b, 0)),   # gathered embeddings
                pl.BlockSpec((E, L), lambda b, n: (0, 0)),    # hidden weight (E, L)
                pl.BlockSpec((1, L), lambda b, n: (0, 0)),    # hidden bias
                pl.BlockSpec((L, TN), lambda b, n: (0, n)),   # output weight tile
                pl.BlockSpec((1, TN), lambda b, n: (0, n)),   # output bias tile
            ],
            out_specs=[
                pl.BlockSpec((TB, L), lambda b, n: (b, 0)),   # latent
                pl.BlockSpec((TB, 1), lambda b, n: (b, 0)),   # per-row logsumexp
            ],
            scratch_shapes=[
                pltpu.VMEM((TB, L), jnp.float32),             # normalized latent (f32)
                pltpu.VMEM((TB, L), jnp.bfloat16),            # normalized latent (bf16)
                pltpu.VMEM((TB, 1), jnp.float32),             # running max m
                pltpu.VMEM((TB, 1), jnp.float32),             # running sum l
            ],
        ),
        out_shape=[
            jax.ShapeDtypeStruct((B_pad, L), jnp.float32),
            jax.ShapeDtypeStruct((B_pad, 1), jnp.float32),
        ],
        compiler_params=pltpu.CompilerParams(
            dimension_semantics=("parallel", "arbitrary"),
            vmem_limit_bytes=_vmem_limit_bytes(TB, TN, E, L, cap),
        ),
    )(emb, wh, bh, wo, bo)

    latent = latent_pad[:B]

    # target logit in JAX glue: tiny (B,)-sized gather, like the embedding gather
    tgt = targets.astype(jnp.int32)
    w_cols = jnp.take(wo, tgt, axis=1).astype(jnp.float32)    # (L, B)
    tgt_logit = jnp.sum(latent * w_cols.T, axis=1) + bo[0, tgt]

    loss = jnp.mean(lse_pad[:B, 0] - tgt_logit)   # CrossEntropyLoss reduction='mean'
    return latent, loss


def init_params(key, num_nodes, emb_dim, latent_size):
    """Deterministic xavier-uniform style init (shapes match the PyTorch module)."""
    k1, k2, k3, k4, k5 = jax.random.split(key, 5)

    def xavier(k, shape):
        fan_in, fan_out = shape[1], shape[0]
        bound = (6.0 / (fan_in + fan_out)) ** 0.5
        return jax.random.uniform(k, shape, jnp.float32, -bound, bound)

    return {
        "emb_table": xavier(k1, (num_nodes, emb_dim)),      # nn.Embedding weight
        "w_hidden": xavier(k2, (latent_size, emb_dim)),     # nn.Linear weight
        "b_hidden": jax.random.uniform(
            k3, (latent_size,), jnp.float32,
            -1.0 / emb_dim ** 0.5, 1.0 / emb_dim ** 0.5),
        # SampledSoftmax output projection params (eval / full-softmax path)
        "w_out": xavier(k4, (num_nodes, latent_size)),
        "b_out": jax.random.uniform(
            k5, (num_nodes,), jnp.float32,
            -1.0 / latent_size ** 0.5, 1.0 / latent_size ** 0.5),
    }
    # TODO(synk): training-mode sampled-softmax (LogUniform negative sampling of
    # n_sampled classes) is a data-dependent gather of weight rows; only the
    # eval (full-softmax) path is implemented here.


def _reference(source, targets, prepared):
    """Pure-JAX reference using the same (bf16-rounded) weights, f32 math."""
    emb = jnp.take(prepared["emb_table"].astype(jnp.float32), source, axis=0)
    h = emb @ prepared["w_hidden_t"].astype(jnp.float32) + prepared["b_hidden"]
    norm = jnp.sqrt(jnp.sum(h * h, axis=1, keepdims=True))
    norm = jnp.where(norm == 0.0, 1.0, norm)
    latent = h / norm
    logits = latent @ prepared["w_out_t"].astype(jnp.float32) + prepared["b_out"]
    lse = jax.scipy.special.logsumexp(logits, axis=1)
    tgt_logit = jnp.take_along_axis(logits, targets[:, None], axis=1)[:, 0]
    return latent, jnp.mean(lse - tgt_logit)


if __name__ == "__main__":
    num_nodes = 128
    emb_dim = 32
    latent_size = 32
    batch = 8

    key = jax.random.PRNGKey(0)
    kp, ks, kt = jax.random.split(key, 3)

    params = init_params(kp, num_nodes, emb_dim, latent_size)
    prepared = prepare_params(params)
    source = jax.random.randint(ks, (batch,), 0, num_nodes, dtype=jnp.int32)
    targets = jax.random.randint(kt, (batch,), 0, num_nodes, dtype=jnp.int32)

    latent, loss = jax.jit(bionet_embedding_forward)(source, targets, prepared)
    jax.block_until_ready((latent, loss))

    assert latent.shape == (batch, latent_size)
    assert loss.shape == ()
    assert bool(jnp.isfinite(loss))

    lat_ref, loss_ref = _reference(source, targets, prepared)
    assert bool(jnp.allclose(latent, lat_ref, atol=5e-3, rtol=1e-2)), "latent mismatch"
    assert bool(jnp.allclose(loss, loss_ref, atol=3e-2, rtol=1e-2)), "loss mismatch"

    print("KERNEL_OK")
</pallas_src>

<mosaic_0001>
module attributes {stable_mosaic.version = 11 : i64} {
  func.func @bionet_kernel(%arg0: i32, %arg1: i32, %arg2: memref<16x32xbf16, #tpu.memory_space<vmem>>, %arg3: memref<32x32xbf16, #tpu.memory_space<vmem>>, %arg4: memref<1x32xf32, #tpu.memory_space<vmem>>, %arg5: memref<32x128xbf16, #tpu.memory_space<vmem>>, %arg6: memref<1x128xf32, #tpu.memory_space<vmem>>, %arg7: memref<16x32xf32, #tpu.memory_space<vmem>>, %arg8: memref<16x1xf32, #tpu.memory_space<vmem>>, %arg9: memref<16x32xf32, #tpu.memory_space<vmem>>, %arg10: memref<16x32xbf16, #tpu.memory_space<vmem>>, %arg11: memref<16x1xf32, #tpu.memory_space<vmem>>, %arg12: memref<16x1xf32, #tpu.memory_space<vmem>>) attributes {dimension_semantics = [#tpu.dimension_semantics<parallel>, #tpu.dimension_semantics<arbitrary>], iteration_bounds = array<i64: 1, 1>, scalar_prefetch = 0 : i64, scratch_operands = 4 : i64, tpu.core_type = #tpu.core_type<tc>, window_params = [{transform_indices = @transform_0, window_bounds = array<i64: 16, 32>}, {pipeline_mode = #tpu.pipeline_mode<synchronous>, transform_indices = @transform_1, window_bounds = array<i64: 32, 32>}, {pipeline_mode = #tpu.pipeline_mode<synchronous>, transform_indices = @transform_2, window_bounds = array<i64: 1, 32>}, {transform_indices = @transform_3, window_bounds = array<i64: 32, 128>}, {transform_indices = @transform_4, window_bounds = array<i64: 1, 128>}, {transform_indices = @transform_5, window_bounds = array<i64: 16, 32>}, {transform_indices = @transform_6, window_bounds = array<i64: 16, 1>}]} {
    %c0_i32 = arith.constant 0 : i32
    %0 = arith.cmpi eq, %arg1, %c0_i32 : i32
    %1 = arith.extui %0 : i1 to i32
    %c0_i32_0 = arith.constant 0 : i32
    %2 = arith.cmpi ne, %1, %c0_i32_0 : i32
    scf.if %2 {
      %c0_18 = arith.constant 0 : index
      %c0_19 = arith.constant 0 : index
      %28 = vector.load %arg2[%c0_18, %c0_19] : memref<16x32xbf16, #tpu.memory_space<vmem>>, vector<16x32xbf16>
      %c0_20 = arith.constant 0 : index
      %c0_21 = arith.constant 0 : index
      %29 = vector.load %arg3[%c0_20, %c0_21] : memref<32x32xbf16, #tpu.memory_space<vmem>>, vector<32x32xbf16>
      %cst_22 = arith.constant dense<0.000000e+00> : vector<16x32xf32>
      %30 = tpu.matmul %28, %29, %cst_22 {dimension_numbers = #tpu.dot_dimension_numbers<[1], [0], [0], [1], [0, 0, 1, 1], [], []>} : vector<16x32xbf16>, vector<32x32xbf16>, vector<16x32xf32> -> vector<16x32xf32>
      %c0_23 = arith.constant 0 : index
      %c0_24 = arith.constant 0 : index
      %31 = vector.load %arg4[%c0_23, %c0_24] : memref<1x32xf32, #tpu.memory_space<vmem>>, vector<1x32xf32>
      %32 = vector.broadcast %31 : vector<1x32xf32> to vector<16x32xf32>
      %33 = arith.addf %30, %32 : vector<16x32xf32>
      %34 = arith.mulf %33, %33 : vector<16x32xf32>
      %cst_25 = arith.constant dense<0.000000e+00> : vector<16xf32>
      %35 = vector.multi_reduction <add>, %34, %cst_25 [1] : vector<16x32xf32> to vector<16xf32>
      %36 = vector.shape_cast %35 : vector<16xf32> to vector<16x1xf32>
      %cst_26 = arith.constant 0.000000e+00 : f32
      %37 = vector.broadcast %cst_26 : f32 to vector<16x1xf32>
      %38 = arith.cmpf oeq, %36, %37 : vector<16x1xf32>
      %39 = math.rsqrt %36 : vector<16x1xf32>
      %cst_27 = arith.constant 1.000000e+00 : f32
      %40 = vector.broadcast %cst_27 : f32 to vector<16x1xf32>
      %41 = arith.select %38, %40, %39 : vector<16x1xi1>, vector<16x1xf32>
      %42 = vector.broadcast %41 : vector<16x1xf32> to vector<16x32xf32>
      %43 = arith.mulf %33, %42 : vector<16x32xf32>
      %c0_28 = arith.constant 0 : index
      %c0_29 = arith.constant 0 : index
      %44 = vector.load %arg9[%c0_28, %c0_29] : memref<16x32xf32, #tpu.memory_space<vmem>>, vector<16x32xf32>
      tpu.vector_store %arg9[%c0_28, %c0_29], %43 {strides = array<i32>} : memref<16x32xf32, #tpu.memory_space<vmem>>, vector<16x32xf32>,
      %45 = arith.truncf %43 : vector<16x32xf32> to vector<16x32xbf16>
      %c0_30 = arith.constant 0 : index
      %c0_31 = arith.constant 0 : index
      %46 = vector.load %arg10[%c0_30, %c0_31] : memref<16x32xbf16, #tpu.memory_space<vmem>>, vector<16x32xbf16>
      tpu.vector_store %arg10[%c0_30, %c0_31], %45 {strides = array<i32>} : memref<16x32xbf16, #tpu.memory_space<vmem>>, vector<16x32xbf16>,
      %cst_32 = arith.constant 0xFF800000 : f32
      %47 = vector.broadcast %cst_32 : f32 to vector<16x1xf32>
      %c0_33 = arith.constant 0 : index
      %c0_34 = arith.constant 0 : index
      %48 = vector.load %arg11[%c0_33, %c0_34] : memref<16x1xf32, #tpu.memory_space<vmem>>, vector<16x1xf32>
      tpu.vector_store %arg11[%c0_33, %c0_34], %47 {strides = array<i32>} : memref<16x1xf32, #tpu.memory_space<vmem>>, vector<16x1xf32>,
      %cst_35 = arith.constant 0.000000e+00 : f32
      %49 = vector.broadcast %cst_35 : f32 to vector<16x1xf32>
      %c0_36 = arith.constant 0 : index
      %c0_37 = arith.constant 0 : index
      %50 = vector.load %arg12[%c0_36, %c0_37] : memref<16x1xf32, #tpu.memory_space<vmem>>, vector<16x1xf32>
      tpu.vector_store %arg12[%c0_36, %c0_37], %49 {strides = array<i32>} : memref<16x1xf32, #tpu.memory_space<vmem>>, vector<16x1xf32>,
    } else {
    }
    %c0 = arith.constant 0 : index
    %c0_1 = arith.constant 0 : index
    %3 = vector.load %arg10[%c0, %c0_1] : memref<16x32xbf16, #tpu.memory_space<vmem>>, vector<16x32xbf16>
    %c0_2 = arith.constant 0 : index
    %c0_3 = arith.constant 0 : index
    %4 = vector.load %arg5[%c0_2, %c0_3] : memref<32x128xbf16, #tpu.memory_space<vmem>>, vector<32x128xbf16>
    %cst = arith.constant dense<0.000000e+00> : vector<16x128xf32>
    %5 = tpu.matmul %3, %4, %cst {dimension_numbers = #tpu.dot_dimension_numbers<[1], [0], [0], [1], [0, 0, 1, 1], [], []>} : vector<16x32xbf16>, vector<32x128xbf16>, vector<16x128xf32> -> vector<16x128xf32>
    %c0_4 = arith.constant 0 : index
    %c0_5 = arith.constant 0 : index
    %6 = vector.load %arg6[%c0_4, %c0_5] : memref<1x128xf32, #tpu.memory_space<vmem>>, vector<1x128xf32>
    %7 = vector.broadcast %6 : vector<1x128xf32> to vector<16x128xf32>
    %8 = arith.addf %5, %7 : vector<16x128xf32>
    %c0_6 = arith.constant 0 : index
    %c0_7 = arith.constant 0 : index
    %9 = vector.load %arg11[%c0_6, %c0_7] : memref<16x1xf32, #tpu.memory_space<vmem>>, vector<16x1xf32>
    %cst_8 = arith.constant dense<0xFF800000> : vector<16xf32>
    %10 = vector.multi_reduction <maximumf>, %8, %cst_8 [1] : vector<16x128xf32> to vector<16xf32>
    %11 = vector.shape_cast %10 : vector<16xf32> to vector<16x1xf32>
    %12 = arith.maximumf %9, %11 : vector<16x1xf32>
    %13 = arith.subf %9, %12 : vector<16x1xf32>
    %14 = math.exp %13 : vector<16x1xf32>
    %c0_9 = arith.constant 0 : index
    %c0_10 = arith.constant 0 : index
    %15 = vector.load %arg12[%c0_9, %c0_10] : memref<16x1xf32, #tpu.memory_space<vmem>>, vector<16x1xf32>
    %16 = arith.mulf %14, %15 : vector<16x1xf32>
    %17 = vector.broadcast %12 : vector<16x1xf32> to vector<16x128xf32>
    %18 = arith.subf %8, %17 : vector<16x128xf32>
    %19 = math.exp %18 : vector<16x128xf32>
    %cst_11 = arith.constant dense<0.000000e+00> : vector<16xf32>
    %20 = vector.multi_reduction <add>, %19, %cst_11 [1] : vector<16x128xf32> to vector<16xf32>
    %21 = vector.shape_cast %20 : vector<16xf32> to vector<16x1xf32>
    %22 = arith.addf %16, %21 : vector<16x1xf32>
    %c0_12 = arith.constant 0 : index
    %c0_13 = arith.constant 0 : index
    %23 = vector.load %arg12[%c0_12, %c0_13] : memref<16x1xf32, #tpu.memory_space<vmem>>, vector<16x1xf32>
    tpu.vector_store %arg12[%c0_12, %c0_13], %22 {strides = array<i32>} : memref<16x1xf32, #tpu.memory_space<vmem>>, vector<16x1xf32>,
    %c0_14 = arith.constant 0 : index
    %c0_15 = arith.constant 0 : index
    %24 = vector.load %arg11[%c0_14, %c0_15] : memref<16x1xf32, #tpu.memory_space<vmem>>, vector<16x1xf32>
    tpu.vector_store %arg11[%c0_14, %c0_15], %12 {strides = array<i32>} : memref<16x1xf32, #tpu.memory_space<vmem>>, vector<16x1xf32>,
    %c0_i32_16 = arith.constant 0 : i32
    %25 = arith.cmpi eq, %arg1, %c0_i32_16 : i32
    %26 = arith.extui %25 : i1 to i32
    %c0_i32_17 = arith.constant 0 : i32
    %27 = arith.cmpi ne, %26, %c0_i32_17 : i32
    scf.if %27 {
      %c0_18 = arith.constant 0 : index
      %c0_19 = arith.constant 0 : index
      %28 = vector.load %arg9[%c0_18, %c0_19] : memref<16x32xf32, #tpu.memory_space<vmem>>, vector<16x32xf32>
      %c0_20 = arith.constant 0 : index
      %c0_21 = arith.constant 0 : index
      %29 = vector.load %arg7[%c0_20, %c0_21] : memref<16x32xf32, #tpu.memory_space<vmem>>, vector<16x32xf32>
      tpu.vector_store %arg7[%c0_20, %c0_21], %28 {strides = array<i32>} : memref<16x32xf32, #tpu.memory_space<vmem>>, vector<16x32xf32>,
      %c0_22 = arith.constant 0 : index
      %c0_23 = arith.constant 0 : index
      %30 = vector.load %arg11[%c0_22, %c0_23] : memref<16x1xf32, #tpu.memory_space<vmem>>, vector<16x1xf32>
      %c0_24 = arith.constant 0 : index
      %c0_25 = arith.constant 0 : index
      %31 = vector.load %arg12[%c0_24, %c0_25] : memref<16x1xf32, #tpu.memory_space<vmem>>, vector<16x1xf32>
      %32 = math.log %31 : vector<16x1xf32>
      %33 = arith.addf %30, %32 : vector<16x1xf32>
      %c0_26 = arith.constant 0 : index
      %c0_27 = arith.constant 0 : index
      %34 = vector.load %arg8[%c0_26, %c0_27] : memref<16x1xf32, #tpu.memory_space<vmem>>, vector<16x1xf32>
      tpu.vector_store %arg8[%c0_26, %c0_27], %33 {strides = array<i32>} : memref<16x1xf32, #tpu.memory_space<vmem>>, vector<16x1xf32>,
    } else {
    }
    return
  }
  func.func @transform_0(%arg0: i32, %arg1: i32) -> (i32, i32) {
    %c0_i32 = arith.constant 0 : i32
    %c0_i32_0 = arith.constant 0 : i32
    return %arg0, %c0_i32 : i32, i32
  }
  func.func @transform_1(%arg0: i32, %arg1: i32) -> (i32, i32) {
    %c0_i32 = arith.constant 0 : i32
    %c0_i32_0 = arith.constant 0 : i32
    %c0_i32_1 = arith.constant 0 : i32
    return %c0_i32, %c0_i32_0 : i32, i32
  }
  func.func @transform_2(%arg0: i32, %arg1: i32) -> (i32, i32) {
    %c0_i32 = arith.constant 0 : i32
    %c0_i32_0 = arith.constant 0 : i32
    %c0_i32_1 = arith.constant 0 : i32
    return %c0_i32, %c0_i32_0 : i32, i32
  }
  func.func @transform_3(%arg0: i32, %arg1: i32) -> (i32, i32) {
    %c0_i32 = arith.constant 0 : i32
    %c0_i32_0 = arith.constant 0 : i32
    return %c0_i32, %arg1 : i32, i32
  }
  func.func @transform_4(%arg0: i32, %arg1: i32) -> (i32, i32) {
    %c0_i32 = arith.constant 0 : i32
    %c0_i32_0 = arith.constant 0 : i32
    return %c0_i32, %arg1 : i32, i32
  }
  func.func @transform_5(%arg0: i32, %arg1: i32) -> (i32, i32) {
    %c0_i32 = arith.constant 0 : i32
    %c0_i32_0 = arith.constant 0 : i32
    return %arg0, %c0_i32 : i32, i32
  }
  func.func @transform_6(%arg0: i32, %arg1: i32) -> (i32, i32) {
    %c0_i32 = arith.constant 0 : i32
    %c0_i32_0 = arith.constant 0 : i32
    return %arg0, %c0_i32 : i32, i32
  }
}

</mosaic_0001>

<bundles_post_ra>
// kernel: bionet_embedding_forward.1
= control target key start
LH: loop header
LB: loop body
LE: loop exit
PB: predicated region body
PF: predicated region fallthrough
CT: control target
= control target key end

     0   :  { %v326_v0 = vmov 0.0   ;;  %vm327_vm0 = vmmov 0   ;;  %vm57_vm1 = vcmask 261120   ;;  %vm122_vm4 = vcmask 7168   ;;  %s425_s1 = inlined_call_operand.vmem [shape: bf16[32,32], index: 1, kind: input, shape index: {}]   ;;  %s426_s0 = inlined_call_operand.vmem [shape: bf16[16,32], index: 0, kind: input, shape index: {}]   ;;  %s427_s2 = inlined_call_operand.vmem [shape: f32[1,32], index: 2, kind: input, shape index: {}]   ;;  %s428_s3 = inlined_call_operand.vmem [shape: bf16[32,128], index: 3, kind: input, shape index: {}]   ;;  %s429_s5 = inlined_call_operand.vmem [shape: f32[16,32], index: 5, kind: output, shape index: {0}]   ;;  %s430_s4 = inlined_call_operand.vmem [shape: f32[1,128], index: 4, kind: input, shape index: {}]   ;;  %s431_s6 = inlined_call_operand.vmem [shape: f32[16,1], index: 6, kind: output, shape index: {1}]  }
   0x1   :  { %283 = vmatprep.subr.bf16.mxu0 %v326_v0  ;;  %v305_v1 = vld [vmem:[%s425_s1] sm:$0xff]   ;;  %287 = vmatprep.mubr.msk.bf16.mxu0 %vm327_vm0, %v326_v0  ;;  %v306_v2 = vld [vmem:[%s425_s1 + $0x8] sm:$0xff]   ;;  %v328_v29 = vmov -inf   ;;  %125 = vst.msk [vmem:[#allocation5] sm:$0xff] %vm122_vm4, %v326_v0  ;;  %126 = vst.msk [vmem:[#allocation5 + $0x8] sm:$0xff] %vm122_vm4, %v326_v0  ;;  %v329_v37 = vmov 0  }
   0x2   :  { %291 = vmatprep.subr.bf16.mxu1 %v326_v0  ;;  %295 = vmatprep.mubr.msk.bf16.mxu1 %vm327_vm0, %v326_v0  ;;  %v307_v3 = vld [vmem:[%s426_s0] sm:$0xff]   ;;  %v309_v16 = vld [vmem:[%s428_s3 + $0x8] sm:$0xff]   ;;  %123 = vst.msk [vmem:[#allocation4] sm:$0xff] %vm122_vm4, %v328_v29  ;;  %124 = vst.msk [vmem:[#allocation4 + $0x8] sm:$0xff] %vm122_vm4, %v328_v29 }
   0x3   :  { %284 = vmatpush3.bf16.msra.mxu0 %v305_v1  ;;  %v268_v4 = vld [vmem:[%s427_s2] ss:$0 sm:$0xff]  ;;  %303 = vset.pattern.permute.xlu0 %v329_v37 }
   0x4   :  { %285 = vmatprep.subr.bf16.mxu0 %v326_v0  ;;  %v308_v15 = vld [vmem:[%s428_s3] sm:$0xff]   ;;  %304 = vset.pattern.permute.xlu1 %v329_v37 }
   0x5   :  { %292 = vmatpush3.bf16.msra.mxu1 %v308_v15  ;;  %v273_v30 = vld [vmem:[%s430_s4] ss:$0 sm:$0xff] }
   0x6   :  { %293 = vmatprep.subr.bf16.mxu1 %v326_v0 }
   0x7   :  { %286 = vmatpush3.bf16.msra.mxu0 %v306_v2 }
   0x8   :  { %v210_v57 = vld [vmem:[#allocation5] sm:$0xff]  ;;  %v211_v61 = vld [vmem:[#allocation5 + $0x8] sm:$0xff] }
   0x9   :  { %294 = vmatpush3.bf16.msra.mxu1 %v309_v16  ;;  %v196_v38 = vld [vmem:[#allocation4] sm:$0xff]  ;;  %v197_v41 = vld [vmem:[#allocation4 + $0x8] sm:$0xff] }
   0xa   :  { %288 = vmatmul.mubr.msk.bf16.vlgmr.msra.gmra.mrb[0].mxu0 %vm57_vm1, %v307_v3 }
  0xdd   :  { %v95_v5 = vpop.f32.mrb[0].mxu0 }
  0xde   :  { %v96_v6 = vadd.f32 %v268_v4, %v95_v5  ;;  %v289_v7 = vpop.f32.mrb[1].mxu0 }
  0xdf   :  { %v98_v8 = vpop.f32.mrb[2].mxu0 }
  0xe0   :  { %v99_v9 = vadd.f32 %v268_v4, %v98_v8  ;;  %v290_v10 = vpop.f32.mrb[3].mxu0  ;;  %v102_v11 = vmul.f32 %v96_v6, %v96_v6 }
  0xe2   :  { %v104_v12 = vsel %vm57_vm1, %v102_v11, 0.0  ;;  %v103_v13 = vmul.f32 %v99_v9, %v99_v9 }
  0xe3   :  { %105 = vadd.xlane.f32.xlu0 %v104_v12 }
  0xe4   :  { %v107_v14 = vsel %vm57_vm1, %v103_v13, 0.0 }
  0xe7   :  { %108 = vadd.xlane.f32.xlu0 %v107_v14 }
 0x170   :  { %v106_v17 = vpop.xlane.xlu0 %105 }
 0x171   :  { %310 = vrsqrt.f32 %v106_v17  ;;  %vm110_vm2 = vcmp.eq.f32.partialorder %v106_v17, 0.0 }
 0x174   :  { %v109_v18 = vpop.xlane.xlu0 %108 }
 0x175   :  { %312 = vrsqrt.f32 %v109_v18  ;;  %vm111_vm3 = vcmp.eq.f32.partialorder %v109_v18, 0.0 }
 0x17b   :  { %v311_v19 = vpop.eup %310 }
 0x17c   :  { %v114_v20 = vsel %vm110_vm2, 1.0, %v311_v19 }
 0x17d   :  { %v116_v21 = vmul.f32 %v114_v20, %v96_v6 }
 0x17f   :  { %v313_v22 = vpop.eup %312  ;;  %118 = vst.msk [vmem:[#allocation2] sm:$0xff] %vm57_vm1, %v116_v21 }
 0x180   :  { %v115_v23 = vsel %vm111_vm3, 1.0, %v313_v22 }
 0x181   :  { %v117_v24 = vmul.f32 %v115_v23, %v99_v9 }
 0x183   :  { %119 = vst.msk [vmem:[#allocation2 + $0x8] sm:$0xff] %vm57_vm1, %v117_v24  ;;  %v120_v25 = vpack.c.bf16 %v117_v24, %v116_v21 }
 0x185   :  { %121 = vst.msk [vmem:[#allocation3] sm:$0xff] %vm57_vm1, %v120_v25 }
 0x186   :  { %v244_v26 = vld [vmem:[#allocation2] sm:$0xff] }
 0x187   :  { %246 = vst.msk [vmem:[%s429_s5] sm:$0xff] %vm57_vm1, %v244_v26 }
 0x18a   :  { %v245_v27 = vld [vmem:[#allocation2 + $0x8] sm:$0xff] }
 0x18b   :  { %247 = vst.msk [vmem:[%s429_s5 + $0x8] sm:$0xff] %vm57_vm1, %v245_v27 }
 0x18c   :  { %v127_v28 = vld [vmem:[#allocation3] sm:$0xff] }
 0x18d   :  { %296 = vmatmul.mubr.msk.bf16.vlgmr.msra.gmra.mrb[0].mxu1 %vm57_vm1, %v127_v28 }
 0x260   :  { %v189_v31 = vpop.f32.mrb[0].mxu1 }
 0x261   :  { %v190_v32 = vadd.f32 %v273_v30, %v189_v31  ;;  %v297_v33 = vpop.f32.mrb[1].mxu1 }
 0x262   :  { %v192_v34 = vpop.f32.mrb[2].mxu1 }
 0x263   :  { %198 = vmax.xlane.f32.xlu1 %v190_v32  ;;  %v298_v35 = vpop.f32.mrb[3].mxu1  ;;  %v193_v36 = vadd.f32 %v273_v30, %v192_v34 }
 0x267   :  { %200 = vmax.xlane.f32.xlu1 %v193_v36 }
 0x2f0   :  { %v199_v39 = vpop.xlane.xlu1 %198 }
 0x2f1   :  { %v202_v40 = vmax.f32 %v196_v38, %v199_v39 }
 0x2f3   :  { %v204_v42 = vsub.f32 %v196_v38, %v202_v40  ;;  %239 = vst.msk [vmem:[#allocation4] sm:$0xff] %vm122_vm4, %v202_v40  ;;  %216 = vperm.xlu0 %303, %v202_v40  }
 0x2f4   :  { %v201_v43 = vpop.xlane.xlu1 %200 }
 0x2f5   :  { %v203_v44 = vmax.f32 %v197_v41, %v201_v43  ;;  %v206_v54 = vmul.f32 1.442695, %v204_v42 }
 0x2f7   :  { %v205_v45 = vsub.f32 %v197_v41, %v203_v44  ;;  %240 = vst.msk [vmem:[#allocation4 + $0x8] sm:$0xff] %vm122_vm4, %v203_v44  ;;  %221 = vperm.xlu1 %304, %v203_v44  }
 0x2f9   :  { %v208_v55 = vmul.f32 1.442695, %v205_v45 }
 0x2fa   :  { %v248_v6 = vld [vmem:[#allocation4] sm:$0xff] }
 0x2fe   :  { %v249_v10 = vld [vmem:[#allocation4 + $0x8] sm:$0xff] }
 0x372   :  { %v217_v46 = vpop.permute.xlu0 %216 }
 0x373   :  { %v224_v47 = vsub.f32 %v190_v32, %v217_v46 }
 0x375   :  { %v226_v48 = vmul.f32 1.442695, %v224_v47 }
 0x376   :  { %v222_v49 = vpop.permute.xlu1 %221 }
 0x377   :  { %314 = vpow2.f32 %v226_v48  ;;  %v225_v50 = vsub.f32 %v193_v36, %v222_v49 }
 0x379   :  { %v228_v51 = vmul.f32 1.442695, %v225_v50 }
 0x37b   :  { %316 = vpow2.f32 %v228_v51 }
 0x37c   :  { %318 = vpow2.f32 %v206_v54 }
 0x37d   :  { %320 = vpow2.f32 %v208_v55 }
 0x381   :  { %v315_v52 = vpop.eup %314 }
 0x382   :  { %230 = vadd.xlane.f32.xlu1 %v315_v52 }
 0x385   :  { %v317_v53 = vpop.eup %316 }
 0x386   :  { %232 = vadd.xlane.f32.xlu0 %v317_v53  ;;  %v319_v56 = vpop.eup %318 }
 0x387   :  { %v212_v58 = vmul.f32 %v319_v56, %v210_v57  ;;  %v321_v59 = vpop.eup %320 }
 0x388   :  { %v213_v63 = vmul.f32 %v321_v59, %v211_v61 }
 0x40f   :  { %v231_v60 = vpop.xlane.xlu1 %230 }
 0x410   :  { %v234_v62 = vadd.f32 %v231_v60, %v212_v58 }
 0x412   :  { %237 = vst.msk [vmem:[#allocation5] sm:$0xff] %vm122_vm4, %v234_v62 }
 0x413   :  { %v233_v0 = vpop.xlane.xlu0 %232 }
 0x414   :  { %v235_v1 = vadd.f32 %v233_v0, %v213_v63 }
 0x416   :  { %238 = vst.msk [vmem:[#allocation5 + $0x8] sm:$0xff] %vm122_vm4, %v235_v1 }
 0x419   :  { %v250_v2 = vld [vmem:[#allocation5] sm:$0xff] }
 0x41a   :  { %322 = vlog2.f32 %v250_v2 }
 0x41d   :  { %v251_v3 = vld [vmem:[#allocation5 + $0x8] sm:$0xff] }
 0x41e   :  { %324 = vlog2.f32 %v251_v3 }
 0x424   :  { %v323_v4 = vpop.eup %322 }
 0x425   :  { %v253_v5 = vmul.f32 0.6931472, %v323_v4 }
 0x427   :  { %v256_v7 = vadd.f32 %v253_v5, %v248_v6 }
 0x428   :  { %v325_v8 = vpop.eup %324 }
 0x429   :  { %258 = vst.msk [vmem:[%s431_s6] sm:$0xff] %vm122_vm4, %v256_v7  ;;  %v255_v9 = vmul.f32 0.6931472, %v325_v8 }
 0x42b   :  { %v257_v11 = vadd.f32 %v255_v9, %v249_v10 }
 0x42d   :  { %259 = vst.msk [vmem:[%s431_s6 + $0x8] sm:$0xff] %vm122_vm4, %v257_v11 }

</bundles_post_ra>
